<compile_context>
chip_gen: v5e
topology: v5e:2x2
jax: 0.10.0
libtpu: 0.0.40
codegen_flags: <defaults>
</compile_context>

<pallas_src>
import functools

import jax
import jax.numpy as jnp
from jax.experimental import pallas as pl
from jax.experimental.pallas import tpu as pltpu

NEG_SLOPE = 0.01  # torch.nn.LeakyReLU default

# Tile targets (auto-shrunk for small problems).
_TM_TARGET = 512
_TN_TARGET = 512
_TK_TARGET = 2048

_SUBLANE = 16   # bf16 native sublane packing: (16, 128) tiles
_LANE = 128

# Weight-resident fast path budgets (sized against v7x's 64 MiB VMEM, of which
# the default scoped limit is 32 MiB; we raise it explicitly but stay < 48 MiB).
_VMEM_LIMIT_BYTES = 48 * 1024 * 1024
_RESIDENT_WEIGHT_BYTES = 10 * 1024 * 1024
_RESIDENT_VMEM_BUDGET = 40 * 1024 * 1024


def _round_up(x, m):
    return ((x + m - 1) // m) * m


def _pad_and_tile(dim, target, align):
    """Shared helper: padded extent (>= align, tile-divisible) and tile size."""
    padded = _round_up(max(dim, align), align)
    tile = min(target, padded)
    padded = _round_up(padded, tile)
    return padded, tile


def _ff_kernel_resident(x_ref, wt_ref, o_ref):
    """Full-K matmul on a (tm, K) x tile against the VMEM-resident W^T."""
    z = jnp.dot(x_ref[...], wt_ref[...], preferred_element_type=jnp.float32)
    # LeakyReLU(0.01): max(z, 0.01*z) == where(z >= 0, z, 0.01*z) for slope <= 1.
    o_ref[...] = jnp.maximum(z, NEG_SLOPE * z).astype(o_ref.dtype)


def _ff_kernel_tiled(x_ref, wt_ref, o_ref):
    """(tm, tn) output tile, accumulated directly into the f32 output block
    which stays resident across the K grid axis (no scratch needed)."""
    k = pl.program_id(2)

    @pl.when(k == 0)
    def _():
        o_ref[...] = jnp.zeros_like(o_ref)

    o_ref[...] += jnp.dot(
        x_ref[...], wt_ref[...], preferred_element_type=jnp.float32
    )

    @pl.when(k == pl.num_programs(2) - 1)
    def _():
        z = o_ref[...]
        o_ref[...] = jnp.maximum(z, NEG_SLOPE * z)


def prepare_ff_block_weight(weight):
    """One-time weight prep (at param init / update time, not per forward):
    transpose PyTorch (out_dim, in_dim) -> (in_dim, out_dim), cast to bf16,
    zero-pad to lane-aligned, tile-divisible shape."""
    out_dim, in_dim = weight.shape
    kp, _ = _pad_and_tile(in_dim, _TK_TARGET, _LANE)
    np_, _ = _pad_and_tile(out_dim, _TN_TARGET, _LANE)

    wt = weight.T.astype(jnp.bfloat16)  # (in_dim, out_dim)
    if (kp, np_) != (in_dim, out_dim):
        wt = jnp.pad(wt, ((0, kp - in_dim), (0, np_ - out_dim)))
    return wt, out_dim


@functools.partial(jax.jit, static_argnames=("out_dim",))
def ff_block_forward(x, wt_padded, out_dim):
    """x: (B, in_dim) f32; wt_padded: (Kp, Np) bf16 pre-transposed/padded weight.

    Returns LeakyReLU(x @ W.T): (B, out_dim) f32.
    """
    B, in_dim = x.shape
    kp, np_ = wt_padded.shape
    assert wt_padded.dtype == jnp.bfloat16

    # Batch tiling: pad to bf16-native 16-row multiples; prefer >= 2 parallel
    # M blocks so both v7x TensorCores get work when the batch allows it.
    bp0 = _round_up(max(B, _SUBLANE), _SUBLANE)
    tm = min(_TM_TARGET, bp0)
    if bp0 // tm < 2 and bp0 >= 2 * _SUBLANE:
        tm = _round_up(-(-bp0 // 2), _SUBLANE)
    bp = _round_up(bp0, tm)

    # Pad x only if needed (skip the extra HBM round-trip when aligned).
    if (bp, kp) != (B, in_dim):
        x_p = jnp.pad(x, ((0, bp - B), (0, kp - in_dim)))
    else:
        x_p = x
    x_p = x_p.astype(jnp.bfloat16)

    flops = 2 * bp * kp * np_
    bytes_accessed = bp * kp * 2 + kp * np_ * 2 + bp * np_ * 4
    cost = pl.CostEstimate(
        flops=flops, transcendentals=0, bytes_accessed=bytes_accessed
    )
    cparams = dict(vmem_limit_bytes=_VMEM_LIMIT_BYTES)

    weight_bytes = kp * np_ * 2
    resident_footprint = (
        2 * weight_bytes          # resident W^T (double-buffered BlockSpec)
        + 2 * (tm * kp * 2)       # x tiles (bf16, double-buffered)
        + 2 * (tm * np_ * 4)      # f32 output tiles (double-buffered)
    )
    use_resident = (
        weight_bytes <= _RESIDENT_WEIGHT_BYTES
        and resident_footprint <= _RESIDENT_VMEM_BUDGET
    )

    if use_resident:
        # Weight loaded into VMEM once; single streaming pass over x, no K axis.
        out_p = pl.pallas_call(
            _ff_kernel_resident,
            out_shape=jax.ShapeDtypeStruct((bp, np_), jnp.float32),
            grid_spec=pltpu.PrefetchScalarGridSpec(
                num_scalar_prefetch=0,
                grid=(bp // tm,),
                in_specs=[
                    pl.BlockSpec((tm, kp), lambda i: (i, 0)),
                    pl.BlockSpec((kp, np_), lambda i: (0, 0)),
                ],
                out_specs=pl.BlockSpec((tm, np_), lambda i: (i, 0)),
            ),
            compiler_params=pltpu.CompilerParams(
                dimension_semantics=("parallel",), **cparams
            ),
            cost_estimate=cost,
        )(x_p, wt_padded)
    else:
        tk = min(_TK_TARGET, kp)
        tn = min(_TN_TARGET, np_)
        assert kp % tk == 0 and np_ % tn == 0
        # v7x dual-TC: if the parallel grid would be 1x1, split N when possible.
        if (bp // tm) * (np_ // tn) < 2 and tn % (2 * _LANE) == 0:
            tn //= 2

        grid = (bp // tm, np_ // tn, kp // tk)  # K last (reduction axis)

        out_p = pl.pallas_call(
            _ff_kernel_tiled,
            out_shape=jax.ShapeDtypeStruct((bp, np_), jnp.float32),
            grid_spec=pltpu.PrefetchScalarGridSpec(
                num_scalar_prefetch=0,
                grid=grid,
                in_specs=[
                    pl.BlockSpec((tm, tk), lambda i, j, k: (i, k)),
                    pl.BlockSpec((tk, tn), lambda i, j, k: (k, j)),
                ],
                out_specs=pl.BlockSpec((tm, tn), lambda i, j, k: (i, j)),
            ),
            compiler_params=pltpu.CompilerParams(
                dimension_semantics=("parallel", "parallel", "arbitrary"),
                **cparams,
            ),
            cost_estimate=cost,
        )(x_p, wt_padded)

    if (bp, np_) != (B, out_dim):
        return out_p[:B, :out_dim]
    return out_p


if __name__ == "__main__":
    key = jax.random.PRNGKey(0)
    kx, kw = jax.random.split(key)

    B, in_dim, out_dim = 8, 32, 64

    x = jax.random.normal(kx, (B, in_dim), dtype=jnp.float32)
    # Deterministic synthetic weight, PyTorch Linear layout (out_dim, in_dim).
    bound = 1.0 / float(jnp.sqrt(jnp.float32(in_dim)))
    weight = jax.random.uniform(
        kw, (out_dim, in_dim), dtype=jnp.float32, minval=-bound, maxval=bound
    )

    # Weight transpose / cast / padding happens once, outside the forward path.
    wt_padded, out_dim_static = prepare_ff_block_weight(weight)

    out = ff_block_forward(x, wt_padded, out_dim_static)
    out = jax.block_until_ready(out)

    # Sanity check against pure-JAX f32 reference of the PyTorch forward.
    # (Tolerance loosened to account for bf16 operands; accumulation is f32.)
    z_ref = x @ weight.T
    ref = jnp.where(z_ref >= 0, z_ref, NEG_SLOPE * z_ref)
    assert out.shape == (B, out_dim)
    assert jnp.allclose(out, ref, atol=2e-2, rtol=2e-2), float(
        jnp.max(jnp.abs(out - ref))
    )

    # TODO(synk): forward_goodness / train_step (jacrev-based FF weight update)
    # are training-time ops outside this forward-pass kernel.
    print("KERNEL_OK")
</pallas_src>

<mosaic_0001>
module attributes {stable_mosaic.version = 11 : i64} {
  func.func @_ff_kernel_resident(%arg0: i32, %arg1: memref<16x128xbf16, #tpu.memory_space<vmem>>, %arg2: memref<128x128xbf16, #tpu.memory_space<vmem>>, %arg3: memref<16x128xf32, #tpu.memory_space<vmem>>) attributes {dimension_semantics = [#tpu.dimension_semantics<parallel>], iteration_bounds = array<i64: 1>, scalar_prefetch = 0 : i64, scratch_operands = 0 : i64, tpu.core_type = #tpu.core_type<tc>, window_params = [{transform_indices = @transform_0, window_bounds = array<i64: 16, 128>}, {pipeline_mode = #tpu.pipeline_mode<synchronous>, transform_indices = @transform_1, window_bounds = array<i64: 128, 128>}, {transform_indices = @transform_2, window_bounds = array<i64: 16, 128>}]} {
    %c0 = arith.constant 0 : index
    %c0_0 = arith.constant 0 : index
    %0 = vector.load %arg1[%c0, %c0_0] : memref<16x128xbf16, #tpu.memory_space<vmem>>, vector<16x128xbf16>
    %c0_1 = arith.constant 0 : index
    %c0_2 = arith.constant 0 : index
    %1 = vector.load %arg2[%c0_1, %c0_2] : memref<128x128xbf16, #tpu.memory_space<vmem>>, vector<128x128xbf16>
    %cst = arith.constant dense<0.000000e+00> : vector<16x128xf32>
    %2 = tpu.matmul %0, %1, %cst {dimension_numbers = #tpu.dot_dimension_numbers<[1], [0], [0], [1], [0, 0, 1, 1], [], []>} : vector<16x128xbf16>, vector<128x128xbf16>, vector<16x128xf32> -> vector<16x128xf32>
    %cst_3 = arith.constant 0.00999999977 : f32
    %3 = vector.broadcast %cst_3 : f32 to vector<16x128xf32>
    %4 = arith.mulf %3, %2 : vector<16x128xf32>
    %5 = arith.maximumf %2, %4 : vector<16x128xf32>
    %c0_4 = arith.constant 0 : index
    %c0_5 = arith.constant 0 : index
    %6 = vector.load %arg3[%c0_4, %c0_5] : memref<16x128xf32, #tpu.memory_space<vmem>>, vector<16x128xf32>
    tpu.vector_store %arg3[%c0_4, %c0_5], %5 {strides = array<i32>} : memref<16x128xf32, #tpu.memory_space<vmem>>, vector<16x128xf32>,
    return
  }
  func.func @transform_0(%arg0: i32) -> (i32, i32) {
    %c0_i32 = arith.constant 0 : i32
    %c0_i32_0 = arith.constant 0 : i32
    return %arg0, %c0_i32 : i32, i32
  }
  func.func @transform_1(%arg0: i32) -> (i32, i32) {
    %c0_i32 = arith.constant 0 : i32
    %c0_i32_0 = arith.constant 0 : i32
    %c0_i32_1 = arith.constant 0 : i32
    return %c0_i32, %c0_i32_0 : i32, i32
  }
  func.func @transform_2(%arg0: i32) -> (i32, i32) {
    %c0_i32 = arith.constant 0 : i32
    %c0_i32_0 = arith.constant 0 : i32
    return %arg0, %c0_i32 : i32, i32
  }
}

</mosaic_0001>

<bundles_post_ra>
// kernel: ff_block_forward.1
= control target key start
LH: loop header
LB: loop body
LE: loop exit
PB: predicated region body
PF: predicated region fallthrough
CT: control target
= control target key end

     0   :  { %7 = vsyncpa [#allocation3], 0  ;;  %s198_s12 = smov [#allocation2]   ;;  %s199_s14 = smov 64   ;;  %s228_s0 = inlined_call_operand.vmem [shape: bf16[16,128], index: 0, kind: input, shape index: {}]   ;;  %s229_s1 = inlined_call_operand.hbm [shape: bf16[128,128], index: 1, kind: input, shape index: {}]   ;;  %s230_s2 = inlined_call_operand.vmem [shape: f32[16,128], index: 2, kind: output, shape index: {}]  }
   0x1   :  { %s14_s11 = sshll.u32 %s229_s1, 4  ;;  %s16_s13 = sshll.u32 %s198_s12, 4  ;;  %s15_s11 = int_to_ptr.hbm [resolvable:$true] %s14_s11  ;;  %s17_s13 = int_to_ptr.vmem [resolvable:$true] %s16_s13 }
   0x2   :  { %s200_s15 = smov 4  }
   0x3   :  { %22 = dma.hbm_to_vmem [thread:$0]  %s15_s11, 1024, %s17_s13, [#allocation3], %s199_s14, %s199_s14, %s200_s15  }
   0x4   :  { %196 = dma.done.wait [#allocation3], 1024  }
   0x5   :  { %197 = vsyncadd [#allocation3], 4294966272  ;;  %v168_v0 = vld [vmem:[#allocation2 + $0x38] sm:$0xff]  ;;  %v167_v1 = vld [vmem:[#allocation2 + $0x30] sm:$0xff] }
   0x6   :  { %99 = vmatpush.bf16.msra.mxu0 %v168_v0  ;;  %v166_v2 = vld [vmem:[#allocation2 + $0x28] sm:$0xff]  ;;  %v165_v3 = vld [vmem:[#allocation2 + $0x20] sm:$0xff]  ;;  %v164_v4 = vld [vmem:[#allocation2 + $0x18] sm:$0xff] }
   0x7   :  { %v163_v5 = vld [vmem:[#allocation2 + $0x10] sm:$0xff]  ;;  %v162_v6 = vld [vmem:[#allocation2 + $0x8] sm:$0xff]  ;;  %v161_v7 = vld [vmem:[#allocation2] sm:$0xff] }
   0x8   :  { %v160_v8 = vld [vmem:[%s228_s0] sm:$0xff] }
   0xa   :  { %100 = vmatpush.bf16.msra.mxu0 %v167_v1 }
   0xe   :  { %101 = vmatpush.bf16.msra.mxu0 %v166_v2 }
  0x12   :  { %102 = vmatpush.bf16.msra.mxu0 %v165_v3 }
  0x16   :  { %103 = vmatpush.bf16.msra.mxu0 %v164_v4 }
  0x1a   :  { %104 = vmatpush.bf16.msra.mxu0 %v163_v5 }
  0x1e   :  { %105 = vmatpush.bf16.msra.mxu0 %v162_v6 }
  0x22   :  { %106 = vmatpush.bf16.msra.mxu0 %v161_v7 }
  0x25   :  { %107 = vmatmul.bf16.vlgmr.msra.gmra.mxu0 %v160_v8 }
  0xa2   :  { %v108_v9 = vpop.f32.mrf.mxu0 }
  0xa3   :  { %v113_v10 = vmul.f32 0.01, %v108_v9 }
  0xa5   :  { %v115_v11 = vmax.f32 %v108_v9, %v113_v10 }
  0xa7   :  { %117 = vst [vmem:[%s230_s2] sm:$0xff] %v115_v11 }
  0xaa   :  { %v110_v12 = vpop.f32.mrf.mxu0 }
  0xab   :  { %v114_v13 = vmul.f32 0.01, %v110_v12 }
  0xad   :  { %v116_v14 = vmax.f32 %v110_v12, %v114_v13 }
  0xaf   :  { %118 = vst [vmem:[%s230_s2 + $0x8] sm:$0xff] %v116_v14 }
  0xb0   :  { %123 = vsyncpa [#allocation3], 1 }

</bundles_post_ra>
